<compile_context>
chip_gen: v5e
topology: v5e:2x2
jax: 0.10.0
libtpu: 0.0.40
codegen_flags: <defaults>
</compile_context>

<pallas_src>
import numpy as np
import jax
import jax.numpy as jnp
from jax.experimental import pallas as pl
from jax.experimental.pallas import tpu as pltpu


def _round_up(x: int, m: int) -> int:
    return ((x + m - 1) // m) * m


def _leaky_relu(x, negative_slope=0.2):
    return jnp.where(x >= 0, x, negative_slope * x)


def generator_kernel(z_ref,
                     w1_ref, b1_ref,
                     w2_ref, b2_ref,
                     w3_ref, b3_ref,
                     w4_ref, b4_ref,
                     out_ref):
    # z tile arrives as f32; cast to bf16 so the MXU runs in native bf16 mode.
    x = z_ref[...].astype(jnp.bfloat16)

    # fc1 + leaky_relu(0.2)   (bf16 x bf16 operands, f32 accumulate)
    h = jnp.dot(x, w1_ref[...], preferred_element_type=jnp.float32) + b1_ref[...]
    h = _leaky_relu(h)
    # fc2 + leaky_relu(0.2)
    h = jnp.dot(h.astype(jnp.bfloat16), w2_ref[...],
                preferred_element_type=jnp.float32) + b2_ref[...]
    h = _leaky_relu(h)
    # fc3 + leaky_relu(0.2)
    h = jnp.dot(h.astype(jnp.bfloat16), w3_ref[...],
                preferred_element_type=jnp.float32) + b3_ref[...]
    h = _leaky_relu(h)
    # fc4 + tanh
    h = jnp.dot(h.astype(jnp.bfloat16), w4_ref[...],
                preferred_element_type=jnp.float32) + b4_ref[...]
    out_ref[...] = jnp.tanh(h)


def init_generator_params(key, latent_dim, img_shape, hidden_dim=256):
    """Deterministic synthetic parameter init (PyTorch-Linear-like uniform).

    Parameters are kept in their logical (unpadded) f32 shapes, stored as
    (in_features, out_features) so the kernel computes x @ W + b.
    """
    feats = int(np.prod(img_shape))
    dims = [latent_dim, hidden_dim, hidden_dim * 2, hidden_dim * 4, feats]
    params = []
    for i in range(4):
        fan_in, fan_out = dims[i], dims[i + 1]
        key, kw, kb = jax.random.split(key, 3)
        bound = 1.0 / np.sqrt(fan_in)
        w = jax.random.uniform(kw, (fan_in, fan_out), jnp.float32, -bound, bound)
        b = jax.random.uniform(kb, (1, fan_out), jnp.float32, -bound, bound)
        params.extend([w, b])
    return tuple(params)


def generator_reference(z, params, img_shape):
    """Pure-JAX f32 reference (mirrors the PyTorch forward)."""
    w1, b1, w2, b2, w3, b3, w4, b4 = params
    h = _leaky_relu(z @ w1 + b1)
    h = _leaky_relu(h @ w2 + b2)
    h = _leaky_relu(h @ w3 + b3)
    img = jnp.tanh(h @ w4 + b4)
    return img.reshape(z.shape[0], *img_shape)


def generator_forward(z, params, img_shape, *, batch_tile=512):
    w1, b1, w2, b2, w3, b3, w4, b4 = params
    B, latent_dim = z.shape
    feats = int(np.prod(img_shape))

    # Lane-dense / MXU-aligned padded dims (multiples of 128).
    K0 = _round_up(latent_dim, 128)
    H1 = _round_up(w1.shape[1], 128)
    H2 = _round_up(w2.shape[1], 128)
    H3 = _round_up(w3.shape[1], 128)
    Fp = _round_up(feats, 128)

    # Batch tile: multiple of 8 sublanes, capped so tiny batches stay tiny.
    tb = min(batch_tile, _round_up(B, 8))
    Bp = _round_up(B, tb)

    def pad2(a, rows, cols, dtype):
        return jnp.pad(
            a, ((0, rows - a.shape[0]), (0, cols - a.shape[1]))).astype(dtype)

    zp = pad2(z.astype(jnp.float32), Bp, K0, jnp.float32)
    w1p = pad2(w1, K0, H1, jnp.bfloat16); b1p = pad2(b1, 1, H1, jnp.float32)
    w2p = pad2(w2, H1, H2, jnp.bfloat16); b2p = pad2(b2, 1, H2, jnp.float32)
    w3p = pad2(w3, H2, H3, jnp.bfloat16); b3p = pad2(b3, 1, H3, jnp.float32)
    w4p = pad2(w4, H3, Fp, jnp.bfloat16); b4p = pad2(b4, 1, Fp, jnp.float32)

    grid = (Bp // tb,)
    const = lambda i: (0, 0)   # weights/biases: resident across batch tiles

    flops = 2 * Bp * (K0 * H1 + H1 * H2 + H2 * H3 + H3 * Fp)
    bytes_accessed = (
        zp.size * 4 + Bp * Fp * 4
        + (w1p.size + w2p.size + w3p.size + w4p.size) * 2
        + (b1p.size + b2p.size + b3p.size + b4p.size) * 4)

    flat = pl.pallas_call(
        generator_kernel,
        out_shape=jax.ShapeDtypeStruct((Bp, Fp), jnp.float32),
        grid=grid,
        in_specs=[
            pl.BlockSpec((tb, K0), lambda i: (i, 0)),   # z: batch-tiled
            pl.BlockSpec((K0, H1), const), pl.BlockSpec((1, H1), const),
            pl.BlockSpec((H1, H2), const), pl.BlockSpec((1, H2), const),
            pl.BlockSpec((H2, H3), const), pl.BlockSpec((1, H3), const),
            pl.BlockSpec((H3, Fp), const), pl.BlockSpec((1, Fp), const),
        ],
        out_specs=pl.BlockSpec((tb, Fp), lambda i: (i, 0)),
        compiler_params=pltpu.CompilerParams(
            # batch axis is embarrassingly parallel -> megacore / 2 TCs on v7x
            dimension_semantics=("parallel",),
            # explicit VMEM budget; 48 MiB fits v5e/v6e (128 MiB) and v7x (64 MiB)
            vmem_limit_bytes=48 * 1024 * 1024,
        ),
        cost_estimate=pl.CostEstimate(
            flops=flops,
            transcendentals=Bp * Fp,          # tanh
            bytes_accessed=bytes_accessed),
    )(zp, w1p, b1p, w2p, b2p, w3p, b3p, w4p, b4p)

    # Slice off batch/feature padding; reshape like PyTorch `img.view(B, *img_shape)`.
    return flat[:B, :feats].reshape(B, *img_shape)


if __name__ == "__main__":
    # Small shapes consistent with the module.
    batch = 4
    latent_dim = 32
    hidden_dim = 32
    img_shape = (1, 8, 8)  # (C, H, W) -> feats = 64

    key = jax.random.PRNGKey(0)
    key_z, key_p = jax.random.split(key)
    z = jax.random.normal(key_z, (batch, latent_dim), dtype=jnp.float32)
    params = init_generator_params(key_p, latent_dim, img_shape, hidden_dim)

    img = generator_forward(z, params, img_shape)
    img = jax.block_until_ready(img)

    assert img.shape == (batch,) + img_shape, img.shape
    assert img.dtype == jnp.float32
    # tanh output range sanity check
    assert float(jnp.max(jnp.abs(img))) <= 1.0 + 1e-6

    # Numerical check vs pure-JAX f32 reference (bf16 MXU operands => small error).
    ref = generator_reference(z, params, img_shape)
    assert np.allclose(np.asarray(img), np.asarray(ref), atol=5e-2), \
        float(np.max(np.abs(np.asarray(img) - np.asarray(ref))))

    print("KERNEL_OK")
</pallas_src>

<mosaic_0001>
module attributes {stable_mosaic.version = 11 : i64} {
  func.func @generator_kernel(%arg0: i32, %arg1: memref<8x128xf32, #tpu.memory_space<vmem>>, %arg2: memref<128x128xbf16, #tpu.memory_space<vmem>>, %arg3: memref<1x128xf32, #tpu.memory_space<vmem>>, %arg4: memref<128x128xbf16, #tpu.memory_space<vmem>>, %arg5: memref<1x128xf32, #tpu.memory_space<vmem>>, %arg6: memref<128x128xbf16, #tpu.memory_space<vmem>>, %arg7: memref<1x128xf32, #tpu.memory_space<vmem>>, %arg8: memref<128x128xbf16, #tpu.memory_space<vmem>>, %arg9: memref<1x128xf32, #tpu.memory_space<vmem>>, %arg10: memref<8x128xf32, #tpu.memory_space<vmem>>) attributes {dimension_semantics = [#tpu.dimension_semantics<parallel>], iteration_bounds = array<i64: 1>, scalar_prefetch = 0 : i64, scratch_operands = 0 : i64, tpu.core_type = #tpu.core_type<tc>, window_params = [{transform_indices = @transform_0, window_bounds = array<i64: 8, 128>}, {pipeline_mode = #tpu.pipeline_mode<synchronous>, transform_indices = @transform_1, window_bounds = array<i64: 128, 128>}, {pipeline_mode = #tpu.pipeline_mode<synchronous>, transform_indices = @transform_2, window_bounds = array<i64: 1, 128>}, {pipeline_mode = #tpu.pipeline_mode<synchronous>, transform_indices = @transform_3, window_bounds = array<i64: 128, 128>}, {pipeline_mode = #tpu.pipeline_mode<synchronous>, transform_indices = @transform_4, window_bounds = array<i64: 1, 128>}, {pipeline_mode = #tpu.pipeline_mode<synchronous>, transform_indices = @transform_5, window_bounds = array<i64: 128, 128>}, {pipeline_mode = #tpu.pipeline_mode<synchronous>, transform_indices = @transform_6, window_bounds = array<i64: 1, 128>}, {pipeline_mode = #tpu.pipeline_mode<synchronous>, transform_indices = @transform_7, window_bounds = array<i64: 128, 128>}, {pipeline_mode = #tpu.pipeline_mode<synchronous>, transform_indices = @transform_8, window_bounds = array<i64: 1, 128>}, {transform_indices = @transform_9, window_bounds = array<i64: 8, 128>}]} {
    %c0 = arith.constant 0 : index
    %c0_0 = arith.constant 0 : index
    %0 = vector.load %arg1[%c0, %c0_0] : memref<8x128xf32, #tpu.memory_space<vmem>>, vector<8x128xf32>
    %1 = arith.truncf %0 : vector<8x128xf32> to vector<8x128xbf16>
    %c0_1 = arith.constant 0 : index
    %c0_2 = arith.constant 0 : index
    %2 = vector.load %arg2[%c0_1, %c0_2] : memref<128x128xbf16, #tpu.memory_space<vmem>>, vector<128x128xbf16>
    %cst = arith.constant dense<0.000000e+00> : vector<8x128xf32>
    %3 = tpu.matmul %1, %2, %cst {dimension_numbers = #tpu.dot_dimension_numbers<[1], [0], [0], [1], [0, 0, 1, 1], [], []>} : vector<8x128xbf16>, vector<128x128xbf16>, vector<8x128xf32> -> vector<8x128xf32>
    %c0_3 = arith.constant 0 : index
    %c0_4 = arith.constant 0 : index
    %4 = vector.load %arg3[%c0_3, %c0_4] : memref<1x128xf32, #tpu.memory_space<vmem>>, vector<1x128xf32>
    %5 = vector.broadcast %4 : vector<1x128xf32> to vector<8x128xf32>
    %6 = arith.addf %3, %5 : vector<8x128xf32>
    %cst_5 = arith.constant 0.000000e+00 : f32
    %7 = vector.broadcast %cst_5 : f32 to vector<8x128xf32>
    %8 = arith.cmpf oge, %6, %7 : vector<8x128xf32>
    %cst_6 = arith.constant 2.000000e-01 : f32
    %9 = vector.broadcast %cst_6 : f32 to vector<8x128xf32>
    %10 = arith.mulf %9, %6 : vector<8x128xf32>
    %11 = arith.select %8, %6, %10 : vector<8x128xi1>, vector<8x128xf32>
    %12 = arith.truncf %11 : vector<8x128xf32> to vector<8x128xbf16>
    %c0_7 = arith.constant 0 : index
    %c0_8 = arith.constant 0 : index
    %13 = vector.load %arg4[%c0_7, %c0_8] : memref<128x128xbf16, #tpu.memory_space<vmem>>, vector<128x128xbf16>
    %cst_9 = arith.constant dense<0.000000e+00> : vector<8x128xf32>
    %14 = tpu.matmul %12, %13, %cst_9 {dimension_numbers = #tpu.dot_dimension_numbers<[1], [0], [0], [1], [0, 0, 1, 1], [], []>} : vector<8x128xbf16>, vector<128x128xbf16>, vector<8x128xf32> -> vector<8x128xf32>
    %c0_10 = arith.constant 0 : index
    %c0_11 = arith.constant 0 : index
    %15 = vector.load %arg5[%c0_10, %c0_11] : memref<1x128xf32, #tpu.memory_space<vmem>>, vector<1x128xf32>
    %16 = vector.broadcast %15 : vector<1x128xf32> to vector<8x128xf32>
    %17 = arith.addf %14, %16 : vector<8x128xf32>
    %cst_12 = arith.constant 0.000000e+00 : f32
    %18 = vector.broadcast %cst_12 : f32 to vector<8x128xf32>
    %19 = arith.cmpf oge, %17, %18 : vector<8x128xf32>
    %cst_13 = arith.constant 2.000000e-01 : f32
    %20 = vector.broadcast %cst_13 : f32 to vector<8x128xf32>
    %21 = arith.mulf %20, %17 : vector<8x128xf32>
    %22 = arith.select %19, %17, %21 : vector<8x128xi1>, vector<8x128xf32>
    %23 = arith.truncf %22 : vector<8x128xf32> to vector<8x128xbf16>
    %c0_14 = arith.constant 0 : index
    %c0_15 = arith.constant 0 : index
    %24 = vector.load %arg6[%c0_14, %c0_15] : memref<128x128xbf16, #tpu.memory_space<vmem>>, vector<128x128xbf16>
    %cst_16 = arith.constant dense<0.000000e+00> : vector<8x128xf32>
    %25 = tpu.matmul %23, %24, %cst_16 {dimension_numbers = #tpu.dot_dimension_numbers<[1], [0], [0], [1], [0, 0, 1, 1], [], []>} : vector<8x128xbf16>, vector<128x128xbf16>, vector<8x128xf32> -> vector<8x128xf32>
    %c0_17 = arith.constant 0 : index
    %c0_18 = arith.constant 0 : index
    %26 = vector.load %arg7[%c0_17, %c0_18] : memref<1x128xf32, #tpu.memory_space<vmem>>, vector<1x128xf32>
    %27 = vector.broadcast %26 : vector<1x128xf32> to vector<8x128xf32>
    %28 = arith.addf %25, %27 : vector<8x128xf32>
    %cst_19 = arith.constant 0.000000e+00 : f32
    %29 = vector.broadcast %cst_19 : f32 to vector<8x128xf32>
    %30 = arith.cmpf oge, %28, %29 : vector<8x128xf32>
    %cst_20 = arith.constant 2.000000e-01 : f32
    %31 = vector.broadcast %cst_20 : f32 to vector<8x128xf32>
    %32 = arith.mulf %31, %28 : vector<8x128xf32>
    %33 = arith.select %30, %28, %32 : vector<8x128xi1>, vector<8x128xf32>
    %34 = arith.truncf %33 : vector<8x128xf32> to vector<8x128xbf16>
    %c0_21 = arith.constant 0 : index
    %c0_22 = arith.constant 0 : index
    %35 = vector.load %arg8[%c0_21, %c0_22] : memref<128x128xbf16, #tpu.memory_space<vmem>>, vector<128x128xbf16>
    %cst_23 = arith.constant dense<0.000000e+00> : vector<8x128xf32>
    %36 = tpu.matmul %34, %35, %cst_23 {dimension_numbers = #tpu.dot_dimension_numbers<[1], [0], [0], [1], [0, 0, 1, 1], [], []>} : vector<8x128xbf16>, vector<128x128xbf16>, vector<8x128xf32> -> vector<8x128xf32>
    %c0_24 = arith.constant 0 : index
    %c0_25 = arith.constant 0 : index
    %37 = vector.load %arg9[%c0_24, %c0_25] : memref<1x128xf32, #tpu.memory_space<vmem>>, vector<1x128xf32>
    %38 = vector.broadcast %37 : vector<1x128xf32> to vector<8x128xf32>
    %39 = arith.addf %36, %38 : vector<8x128xf32>
    %40 = math.tanh %39 : vector<8x128xf32>
    %c0_26 = arith.constant 0 : index
    %c0_27 = arith.constant 0 : index
    %41 = vector.load %arg10[%c0_26, %c0_27] : memref<8x128xf32, #tpu.memory_space<vmem>>, vector<8x128xf32>
    tpu.vector_store %arg10[%c0_26, %c0_27], %40 {strides = array<i32>} : memref<8x128xf32, #tpu.memory_space<vmem>>, vector<8x128xf32>,
    return
  }
  func.func @transform_0(%arg0: i32) -> (i32, i32) {
    %c0_i32 = arith.constant 0 : i32
    %c0_i32_0 = arith.constant 0 : i32
    return %arg0, %c0_i32 : i32, i32
  }
  func.func @transform_1(%arg0: i32) -> (i32, i32) {
    %c0_i32 = arith.constant 0 : i32
    %c0_i32_0 = arith.constant 0 : i32
    %c0_i32_1 = arith.constant 0 : i32
    return %c0_i32, %c0_i32_0 : i32, i32
  }
  func.func @transform_2(%arg0: i32) -> (i32, i32) {
    %c0_i32 = arith.constant 0 : i32
    %c0_i32_0 = arith.constant 0 : i32
    %c0_i32_1 = arith.constant 0 : i32
    return %c0_i32, %c0_i32_0 : i32, i32
  }
  func.func @transform_3(%arg0: i32) -> (i32, i32) {
    %c0_i32 = arith.constant 0 : i32
    %c0_i32_0 = arith.constant 0 : i32
    %c0_i32_1 = arith.constant 0 : i32
    return %c0_i32, %c0_i32_0 : i32, i32
  }
  func.func @transform_4(%arg0: i32) -> (i32, i32) {
    %c0_i32 = arith.constant 0 : i32
    %c0_i32_0 = arith.constant 0 : i32
    %c0_i32_1 = arith.constant 0 : i32
    return %c0_i32, %c0_i32_0 : i32, i32
  }
  func.func @transform_5(%arg0: i32) -> (i32, i32) {
    %c0_i32 = arith.constant 0 : i32
    %c0_i32_0 = arith.constant 0 : i32
    %c0_i32_1 = arith.constant 0 : i32
    return %c0_i32, %c0_i32_0 : i32, i32
  }
  func.func @transform_6(%arg0: i32) -> (i32, i32) {
    %c0_i32 = arith.constant 0 : i32
    %c0_i32_0 = arith.constant 0 : i32
    %c0_i32_1 = arith.constant 0 : i32
    return %c0_i32, %c0_i32_0 : i32, i32
  }
  func.func @transform_7(%arg0: i32) -> (i32, i32) {
    %c0_i32 = arith.constant 0 : i32
    %c0_i32_0 = arith.constant 0 : i32
    %c0_i32_1 = arith.constant 0 : i32
    return %c0_i32, %c0_i32_0 : i32, i32
  }
  func.func @transform_8(%arg0: i32) -> (i32, i32) {
    %c0_i32 = arith.constant 0 : i32
    %c0_i32_0 = arith.constant 0 : i32
    %c0_i32_1 = arith.constant 0 : i32
    return %c0_i32, %c0_i32_0 : i32, i32
  }
  func.func @transform_9(%arg0: i32) -> (i32, i32) {
    %c0_i32 = arith.constant 0 : i32
    %c0_i32_0 = arith.constant 0 : i32
    return %arg0, %c0_i32 : i32, i32
  }
}

</mosaic_0001>

<bundles_post_ra>
// kernel: tpu_custom_call.1
= control target key start
LH: loop header
LB: loop body
LE: loop exit
PB: predicated region body
PF: predicated region fallthrough
CT: control target
= control target key end

     0   :  { %14 = vsyncpa [#allocation3], 0  ;;  %s882_s0 = inlined_call_operand.hbm [shape: f32[8,128], index: 0, kind: input, shape index: {}]   ;;  %s883_s1 = inlined_call_operand.hbm [shape: bf16[128,128], index: 1, kind: input, shape index: {}]   ;;  %s884_s2 = inlined_call_operand.vmem [shape: f32[1,128], index: 2, kind: input, shape index: {}]   ;;  %s885_s3 = inlined_call_operand.hbm [shape: bf16[128,128], index: 3, kind: input, shape index: {}]   ;;  %s886_s4 = inlined_call_operand.vmem [shape: f32[1,128], index: 4, kind: input, shape index: {}]   ;;  %s887_s5 = inlined_call_operand.hbm [shape: bf16[128,128], index: 5, kind: input, shape index: {}]   ;;  %s888_s6 = inlined_call_operand.vmem [shape: f32[1,128], index: 6, kind: input, shape index: {}]   ;;  %s889_s7 = inlined_call_operand.hbm [shape: bf16[128,128], index: 7, kind: input, shape index: {}]   ;;  %s890_s8 = inlined_call_operand.vmem [shape: f32[1,128], index: 8, kind: input, shape index: {}]   ;;  %s891_s9 = inlined_call_operand.hbm [shape: f32[8,128], index: 9, kind: output, shape index: {}]  }
   0x1   :  { %15 = vsyncpa [#allocation6], 0 }
   0x2   :  { %16 = vsyncpa [#allocation9], 0  ;;  %s33_s11 = sshll.u32 %s883_s1, 4  ;;  %s34_s11 = int_to_ptr.hbm [resolvable:$true] %s33_s11 }
   0x3   :  { %17 = vsyncpa [#allocation4], 0  ;;  %s794_s12 = smov [#allocation5]   ;;  %s63_s16 = sshll.u32 %s887_s5, 4  ;;  %s64_s16 = int_to_ptr.hbm [resolvable:$true] %s63_s16 }
   0x4   :  { %s35_s13 = sshll.u32 %s794_s12, 4  ;;  %s795_s17 = smov 64   ;;  %s36_s13 = int_to_ptr.vmem [resolvable:$true] %s35_s13 }
   0x5   :  { %s796_s18 = smov 4   ;;  %s797_s19 = smov [#allocation8]  }
   0x6   :  { %41 = dma.hbm_to_vmem [thread:$0]  %s34_s11, 1024, %s36_s13, [#allocation6], %s795_s17, %s795_s17, %s796_s18  }
   0x7   :  { %s65_s20 = sshll.u32 %s797_s19, 4  ;;  %s23_s23 = sshll.u32 %s882_s0, 4  ;;  %s66_s20 = int_to_ptr.vmem [resolvable:$true] %s65_s20  ;;  %s24_s23 = int_to_ptr.hbm [resolvable:$true] %s23_s23 }
   0x8   :  { %71 = dma.hbm_to_vmem [thread:$0]  %s64_s16, 1024, %s66_s20, [#allocation9], %s795_s17, %s795_s17, %s796_s18  }
   0x9   :  { %s48_s25 = sshll.u32 %s885_s3, 4  ;;  %s798_s26 = smov [#allocation2]   ;;  %s49_s25 = int_to_ptr.hbm [resolvable:$true] %s48_s25 }
   0xa   :  { %s25_s27 = sshll.u32 %s798_s26, 4  ;;  %s799_s5 = smov [#allocation7]   ;;  %s26_s27 = int_to_ptr.vmem [resolvable:$true] %s25_s27 }
   0xb   :  { %28 = dma.hbm_to_vmem [thread:$0]  %s24_s23, 128, %s26_s27, [#allocation3]  }
   0xc   :  { %s50_s28 = sshll.u32 %s799_s5, 4  ;;  %s78_s10 = sshll.u32 %s889_s7, 4  ;;  %s51_s28 = int_to_ptr.vmem [resolvable:$true] %s50_s28  ;;  %s79_s10 = int_to_ptr.hbm [resolvable:$true] %s78_s10 }
   0xd   :  { %56 = dma.hbm_to_vmem [thread:$0]  %s49_s25, 1024, %s51_s28, [#allocation6], %s795_s17, %s795_s17, %s796_s18  }
   0xe   :  { %s800_s0 = smov [#allocation10]  }
   0xf   :  { %s80_s11 = sshll.u32 %s800_s0, 4  ;;  %s81_s11 = int_to_ptr.vmem [resolvable:$true] %s80_s11 }
  0x10   :  { %86 = dma.hbm_to_vmem [thread:$0]  %s79_s10, 1024, %s81_s11, [#allocation9], %s795_s17, %s795_s17, %s796_s18  }
  0x11   :  { %786 = dma.done.wait [#allocation3], 128  }
  0x12   :  { %787 = vsyncadd [#allocation3], 4294967168 }
  0x13   :  { %788 = dma.done.wait [#allocation6], 2048  }
  0x14   :  { %789 = vsyncadd [#allocation6], 4294965248 }
  0x15   :  { %790 = dma.done.wait [#allocation9], 2048  }
  0x16   :  { %791 = vsyncadd [#allocation9], 4294965248  ;;  %v603_v0 = vld [vmem:[#allocation5 + $0x38] sm:$0xff]  ;;  %v602_v1 = vld [vmem:[#allocation5 + $0x30] sm:$0xff]  ;;  %s801_s16 = smov [#allocation11]  }
  0x17   :  { %179 = vmatpush.bf16.msra.mxu0 %v603_v0  ;;  %v611_v2 = vld [vmem:[#allocation7 + $0x38] sm:$0xff]  ;;  %v610_v3 = vld [vmem:[#allocation7 + $0x30] sm:$0xff]  ;;  %v601_v4 = vld [vmem:[#allocation5 + $0x28] sm:$0xff]  ;;  %s454_s17 = sshll.u32 %s801_s16, 4  ;;  %s455_s17 = int_to_ptr.vmem [resolvable:$true] %s454_s17 }
  0x18   :  { %264 = vmatpush.bf16.msra.mxu1 %v611_v2  ;;  %v609_v5 = vld [vmem:[#allocation7 + $0x28] sm:$0xff]  ;;  %v600_v6 = vld [vmem:[#allocation5 + $0x20] sm:$0xff]  ;;  %v599_v8 = vld [vmem:[#allocation5 + $0x18] sm:$0xff] }
  0x19   :  { %v608_v7 = vld [vmem:[#allocation7 + $0x20] sm:$0xff]  ;;  %v607_v9 = vld [vmem:[#allocation7 + $0x18] sm:$0xff]  ;;  %v598_v10 = vld [vmem:[#allocation5 + $0x10] sm:$0xff] }
  0x1a   :  { %v606_v11 = vld [vmem:[#allocation7 + $0x10] sm:$0xff]  ;;  %v597_v12 = vld [vmem:[#allocation5 + $0x8] sm:$0xff]  ;;  %v596_v13 = vld [vmem:[#allocation5] sm:$0xff] }
  0x1b   :  { %180 = vmatpush.bf16.msra.mxu0 %v602_v1  ;;  %v109_v14 = vld [vmem:[#allocation2] sm:$0xff]  ;;  %v605_v16 = vld [vmem:[#allocation7 + $0x8] sm:$0xff]  ;;  %v604_v17 = vld [vmem:[#allocation7] sm:$0xff] }
  0x1c   :  { %265 = vmatpush.bf16.msra.mxu1 %v610_v3  ;;  %v110_v15 = vpack.c.bf16 %v109_v14, %v109_v14  ;;  %v619_v18 = vld [vmem:[#allocation8 + $0x38] sm:$0xff]  ;;  %v618_v19 = vld [vmem:[#allocation8 + $0x30] sm:$0xff]  ;;  %v617_v20 = vld [vmem:[#allocation8 + $0x28] sm:$0xff] }
  0x1d   :  { %349 = vmatpush.bf16.msra.mxu2 %v619_v18  ;;  %v616_v21 = vld [vmem:[#allocation8 + $0x20] sm:$0xff]  ;;  %v615_v22 = vld [vmem:[#allocation8 + $0x18] sm:$0xff]  ;;  %v614_v23 = vld [vmem:[#allocation8 + $0x10] sm:$0xff] }
  0x1e   :  { %v636_v24 = vld [vmem:[%s884_s2] ss:$0 sm:$0xff]  ;;  %v613_v31 = vld [vmem:[#allocation8 + $0x8] sm:$0xff]  ;;  %v612_v32 = vld [vmem:[#allocation8] sm:$0xff] }
  0x1f   :  { %181 = vmatpush.bf16.msra.mxu0 %v601_v4  ;;  %v627_v33 = vld [vmem:[#allocation10 + $0x38] sm:$0xff]  ;;  %v626_v34 = vld [vmem:[#allocation10 + $0x30] sm:$0xff]  ;;  %v625_v35 = vld [vmem:[#allocation10 + $0x28] sm:$0xff] }
  0x20   :  { %266 = vmatpush.bf16.msra.mxu1 %v609_v5  ;;  %434 = vmatpush.bf16.msra.mxu3 %v627_v33  ;;  %v624_v36 = vld [vmem:[#allocation10 + $0x20] sm:$0xff]  ;;  %v623_v37 = vld [vmem:[#allocation10 + $0x18] sm:$0xff]  ;;  %v622_v38 = vld [vmem:[#allocation10 + $0x10] sm:$0xff] }
  0x21   :  { %350 = vmatpush.bf16.msra.mxu2 %v618_v19  ;;  %v637_v39 = vld [vmem:[%s886_s4] ss:$0 sm:$0xff]  ;;  %v621_v46 = vld [vmem:[#allocation10 + $0x8] sm:$0xff]  ;;  %v620_v47 = vld [vmem:[#allocation10] sm:$0xff] }
  0x22   :  { %v638_v48 = vld [vmem:[%s888_s6] ss:$0 sm:$0xff]  ;;  %s456_s6 = sshll.u32 %s891_s9, 4  ;;  %s457_s6 = int_to_ptr.hbm [resolvable:$true] %s456_s6 }
  0x23   :  { %182 = vmatpush.bf16.msra.mxu0 %v600_v6  ;;  %v639_v55 = vld [vmem:[%s890_s8] ss:$0 sm:$0xff] }
  0x24   :  { %267 = vmatpush.bf16.msra.mxu1 %v608_v7  ;;  %435 = vmatpush.bf16.msra.mxu3 %v626_v34 }
  0x25   :  { %351 = vmatpush.bf16.msra.mxu2 %v617_v20 }
  0x27   :  { %183 = vmatpush.bf16.msra.mxu0 %v599_v8 }
  0x28   :  { %268 = vmatpush.bf16.msra.mxu1 %v607_v9  ;;  %436 = vmatpush.bf16.msra.mxu3 %v625_v35 }
  0x29   :  { %352 = vmatpush.bf16.msra.mxu2 %v616_v21 }
  0x2b   :  { %184 = vmatpush.bf16.msra.mxu0 %v598_v10 }
  0x2c   :  { %269 = vmatpush.bf16.msra.mxu1 %v606_v11  ;;  %437 = vmatpush.bf16.msra.mxu3 %v624_v36 }
  0x2d   :  { %353 = vmatpush.bf16.msra.mxu2 %v615_v22 }
  0x2f   :  { %185 = vmatpush.bf16.msra.mxu0 %v597_v12 }
  0x30   :  { %270 = vmatpush.bf16.msra.mxu1 %v605_v16  ;;  %438 = vmatpush.bf16.msra.mxu3 %v623_v37 }
  0x31   :  { %354 = vmatpush.bf16.msra.mxu2 %v614_v23 }
  0x33   :  { %186 = vmatpush.bf16.msra.mxu0 %v596_v13 }
  0x34   :  { %271 = vmatpush.bf16.msra.mxu1 %v604_v17  ;;  %439 = vmatpush.bf16.msra.mxu3 %v622_v38 }
  0x35   :  { %355 = vmatpush.bf16.msra.mxu2 %v613_v31 }
  0x36   :  { %187 = vmatmul.bf16.vlgmr.msra.gmra.mxu0 %v110_v15 }
  0x38   :  { %440 = vmatpush.bf16.msra.mxu3 %v621_v46 }
  0x39   :  { %356 = vmatpush.bf16.msra.mxu2 %v612_v32 }
  0x3c   :  { %441 = vmatpush.bf16.msra.mxu3 %v620_v47 }
  0xb3   :  { %v188_v25 = vpop.f32.mrf.mxu0 }
  0xb4   :  { %v189_v26 = vadd.f32 %v636_v24, %v188_v25 }
  0xb6   :  { %v193_v27 = vmul.f32 0.2, %v189_v26  ;;  %vm192_vm0 = vcmp.ge.f32.partialorder %v189_v26, 0.0 }
  0xb8   :  { %v194_v28 = vsel %vm192_vm0, %v189_v26, %v193_v27 }
  0xb9   :  { %v195_v29 = vpack.c.bf16 %v194_v28, %v194_v28 }
  0xbb   :  { %v190_v30 = vpop.f32.mrf.mxu0  ;;  %272 = vmatmul.bf16.vlgmr.msra.gmra.mxu1 %v195_v29 }
 0x138   :  { %v273_v40 = vpop.f32.mrf.mxu1 }
 0x139   :  { %v274_v41 = vadd.f32 %v637_v39, %v273_v40 }
 0x13b   :  { %v278_v42 = vmul.f32 0.2, %v274_v41  ;;  %vm277_vm1 = vcmp.ge.f32.partialorder %v274_v41, 0.0 }
 0x13d   :  { %v279_v43 = vsel %vm277_vm1, %v274_v41, %v278_v42 }
 0x13e   :  { %v280_v44 = vpack.c.bf16 %v279_v43, %v279_v43 }
 0x140   :  { %v275_v45 = vpop.f32.mrf.mxu1  ;;  %357 = vmatmul.bf16.vlgmr.msra.gmra.mxu2 %v280_v44 }
 0x1c3   :  { %v358_v49 = vpop.f32.mrf.mxu2 }
 0x1c4   :  { %v359_v50 = vadd.f32 %v638_v48, %v358_v49 }
 0x1c6   :  { %v363_v51 = vmul.f32 0.2, %v359_v50  ;;  %vm362_vm2 = vcmp.ge.f32.partialorder %v359_v50, 0.0 }
 0x1c8   :  { %v364_v52 = vsel %vm362_vm2, %v359_v50, %v363_v51 }
 0x1c9   :  { %v365_v53 = vpack.c.bf16 %v364_v52, %v364_v52 }
 0x1cb   :  { %v360_v54 = vpop.f32.mrf.mxu2  ;;  %442 = vmatmul.bf16.vlgmr.msra.gmra.mxu3 %v365_v53 }
 0x24e   :  { %v443_v56 = vpop.f32.mrf.mxu3 }
 0x24f   :  { %v444_v57 = vadd.f32 %v639_v55, %v443_v56 }
 0x251   :  { %640 = vtanh.f32 %v444_v57 }
 0x256   :  { %v445_v58 = vpop.f32.mrf.mxu3 }
 0x257   :  { %v641_v59 = vpop.eup %640 }
 0x258   :  { %448 = vst [vmem:[#allocation11] sm:$0xff] %v641_v59 }
 0x259   :  { %459 = dma.vmem_to_hbm [thread:$0]  %s455_s17, 128, %s457_s6, [#allocation4]  }
 0x25a   :  { %792 = dma.done.wait [#allocation4], 128  }
 0x25b   :  { %793 = vsyncadd [#allocation4], 4294967168 }
 0x25c   :  { %464 = vsyncpa [#allocation3], 1 }
 0x25d   :  { %465 = vsyncpa [#allocation6], 1 }
 0x25e   :  { %466 = vsyncpa [#allocation9], 1 }
 0x25f   :  { %467 = vsyncpa [#allocation4], 1 }

</bundles_post_ra>
